<compile_context>
chip_gen: v7x
topology: tpu7x:2x2x1
jax: 0.10.0
libtpu: 0.0.40
codegen_flags: <defaults>
</compile_context>

<pallas_src>
import jax
import jax.numpy as jnp
from jax.experimental import pallas as pl
from jax.experimental.pallas import tpu as pltpu

_LN_EPS = 1e-5
_LANE = 128
_MAX_ROWS_PER_BLOCK = 64 * 1024          # tile very large N so per-block VMEM stays small

# Packed parameter slab column groups (each group starts at a 128-lane boundary).
_C_WP, _C_W1, _C_W2, _C_W3, _C_VEC = 0, 128, 256, 384, 512
_SLAB_COLS = 640


# --------------------------------------------------------------------------
# Parameter packing: one lane-aligned (R, 640) f32 slab, weights stored (out, in).
#   cols [  0,   2) : w_proj^T   (pos_dim, 2)
#   cols [128, 128+P): w1^T      (pos_dim, pos_dim)
#   cols [256, 256+P): w2^T      (pos_dim, pos_dim)
#   cols [384, 384+P): w3^T      (num_heads, pos_dim)   (rows zero-padded to R)
#   cols [512, 522) : columns b_proj, g1, be1, b1, g2, be2, b2, g3, be3, b3
# Pack once at init and reuse the slab across calls (it is a pure function of
# the parameters; under jit it constant-folds).
# --------------------------------------------------------------------------
def pack_params(params, num_heads):
    pos_dim = params["w_proj"].shape[1]
    R = max(pos_dim, num_heads)
    slab = jnp.zeros((R, _SLAB_COLS), jnp.float32)
    slab = slab.at[:pos_dim, _C_WP:_C_WP + 2].set(params["w_proj"].T.astype(jnp.float32))
    slab = slab.at[:pos_dim, _C_W1:_C_W1 + pos_dim].set(params["w1"].T.astype(jnp.float32))
    slab = slab.at[:pos_dim, _C_W2:_C_W2 + pos_dim].set(params["w2"].T.astype(jnp.float32))
    slab = slab.at[:num_heads, _C_W3:_C_W3 + pos_dim].set(params["w3"].T.astype(jnp.float32))
    vec_order = ["b_proj", "g1", "be1", "b1", "g2", "be2", "b2", "g3", "be3", "b3"]
    for k, name in enumerate(vec_order):
        v = params[name].reshape(-1).astype(jnp.float32)
        slab = slab.at[:v.shape[0], _C_VEC + k].set(v)
    return slab                           # (R, 640)


def _make_dpb_kernel(pos_dim, num_heads, R):
    def kernel(x_ref, p_ref, o_ref):
        # -- coordinates: (NB, 2) -> lane-dense (2, NB); tiny in-kernel relayout
        #    replaces a standalone XLA transpose + HBM round trip.
        xt = x_ref[...].astype(jnp.float32).T                    # (2, NB)

        # -- parameters: 128-lane-aligned Ref slices (plain loads, own vregs).
        wp0 = p_ref[0:pos_dim, _C_WP + 0:_C_WP + 1]              # (pos_dim, 1)
        wp1 = p_ref[0:pos_dim, _C_WP + 1:_C_WP + 2]
        w1 = p_ref[0:pos_dim, _C_W1:_C_W1 + pos_dim]             # (pos_dim, pos_dim)
        w2 = p_ref[0:pos_dim, _C_W2:_C_W2 + pos_dim]
        w3 = p_ref[0:R, _C_W3:_C_W3 + pos_dim]                   # (R, pos_dim), zero-padded rows

        def vec(k, rows):
            return p_ref[0:rows, _C_VEC + k:_C_VEC + k + 1]      # (rows, 1)

        bp = vec(0, pos_dim)
        g1, be1, b1 = vec(1, pos_dim), vec(2, pos_dim), vec(3, pos_dim)
        g2, be2, b2 = vec(4, pos_dim), vec(5, pos_dim), vec(6, pos_dim)
        g3, be3 = vec(7, pos_dim), vec(8, pos_dim)
        b3 = vec(9, R)

        # -- pos_proj: Linear(2 -> pos_dim).  K=2 is MXU-hostile: two VPU FMAs.
        h = wp0 * xt[0:1, :] + wp1 * xt[1:2, :] + bp             # (pos_dim, NB)

        def ln_relu(v, gamma, beta):
            # LayerNorm over the feature axis = sublane reduction on packed vregs.
            # E[x] and E[x^2] issue concurrently; var = E[x^2] - mu^2.
            inv_n = 1.0 / v.shape[0]
            mu = jnp.sum(v, axis=0, keepdims=True) * inv_n
            m2 = jnp.sum(v * v, axis=0, keepdims=True) * inv_n
            vn = (v - mu) * jax.lax.rsqrt(m2 - mu * mu + _LN_EPS)
            return jnp.maximum(vn * gamma + beta, 0.0)           # ReLU

        # -- pos1 / pos2 / pos3: LN -> ReLU -> Linear.  The small Linears run on
        #    the otherwise-idle MXU: (out,in) x (in,NB) -> lane-dense (out,NB).
        h = jnp.dot(w1, ln_relu(h, g1, be1), preferred_element_type=jnp.float32) + b1
        h = jnp.dot(w2, ln_relu(h, g2, be2), preferred_element_type=jnp.float32) + b2
        h = jnp.dot(w3, ln_relu(h, g3, be3), preferred_element_type=jnp.float32) + b3   # (R, NB)

        # -- back to the module's (N, num_heads) layout; tiny in-kernel relayout
        #    replaces a standalone XLA transpose on the output.
        o_ref[...] = h.T[:, :num_heads].astype(o_ref.dtype)

    return kernel


def _round_up(x, m):
    return (x + m - 1) // m * m


def _multi_tensorcore_device():
    """True for TPU generations exposing >1 TensorCore per device (v4/v5p/v7x)."""
    try:
        kind = jax.devices()[0].device_kind.lower()
    except Exception:
        return False
    return any(tag in kind for tag in ("v4", "v5p", "v7"))


def dynamic_pos_bias(biases, params, *, num_heads, num_blocks=None):
    """biases: (N, 2) -> (N, num_heads), exact PyTorch DynamicPosBias semantics."""
    N, two = biases.shape
    assert two == 2
    pos_dim = params["w_proj"].shape[1]

    slab = pack_params(params, num_heads)                 # (R, 640) lane-aligned slab
    R, C = slab.shape

    multi_tc = _multi_tensorcore_device()
    n_pad = N
    if num_blocks is None:
        if multi_tc and N >= 2 * _LANE:
            # Dual-TC chips: always feed both TensorCores; pad ragged N to 256.
            n_pad = _round_up(N, 2 * _LANE)
            num_blocks = 2
        else:
            # Single-TC chips (v5e/v6e): one grid step = zero pipeline overhead.
            n_pad = _round_up(N, 8) if N % 8 else N
            num_blocks = 1
        # Pathological N: split further so the per-block VMEM footprint stays small.
        while (n_pad // num_blocks) > _MAX_ROWS_PER_BLOCK and n_pad % (num_blocks * 2 * _LANE) == 0:
            num_blocks *= 2
    else:
        assert N % num_blocks == 0
        assert num_blocks == 1 or (N // num_blocks) % _LANE == 0
    NB = n_pad // num_blocks

    x_in = biases if n_pad == N else jnp.pad(biases, ((0, n_pad - N), (0, 0)))

    flops = 2 * n_pad * (2 * pos_dim + 2 * pos_dim * pos_dim + pos_dim * num_heads) \
        + 30 * n_pad * pos_dim
    cost = pl.CostEstimate(
        flops=int(flops),
        transcendentals=int(3 * n_pad),
        bytes_accessed=int(4 * n_pad * (2 + num_heads)) + int(slab.size) * 4)

    out = pl.pallas_call(
        _make_dpb_kernel(pos_dim, num_heads, R),
        out_shape=jax.ShapeDtypeStruct((n_pad, num_heads), jnp.float32),
        grid_spec=pltpu.PrefetchScalarGridSpec(
            num_scalar_prefetch=0,
            grid=(num_blocks,),
            in_specs=[
                pl.BlockSpec((NB, 2), lambda i: (i, 0)),   # coords, relayouted in-kernel
                pl.BlockSpec((R, C), lambda i: (0, 0)),    # packed params (block idx constant
                                                           #  -> fetched once, not per step)
            ],
            out_specs=pl.BlockSpec((NB, num_heads), lambda i: (i, 0)),
        ),
        compiler_params=pltpu.CompilerParams(
            dimension_semantics=("parallel",)),
        cost_estimate=cost,
    )(x_in, slab)

    return out if n_pad == N else out[:N]


# --------------------------------------------------------------------------
# Parameter init (PyTorch-style) and pure-JAX reference.
# --------------------------------------------------------------------------
def init_params(key, dim, num_heads):
    pos_dim = dim // 4
    keys = jax.random.split(key, 4)

    def lin(k, fan_in, fan_out):
        kw, kb = jax.random.split(k)
        bound = 1.0 / jnp.sqrt(fan_in)
        w = jax.random.uniform(kw, (fan_in, fan_out), jnp.float32, -bound, bound)
        b = jax.random.uniform(kb, (1, fan_out), jnp.float32, -bound, bound)
        return w, b

    w_proj, b_proj = lin(keys[0], 2, pos_dim)
    w1, b1 = lin(keys[1], pos_dim, pos_dim)
    w2, b2 = lin(keys[2], pos_dim, pos_dim)
    w3, b3 = lin(keys[3], pos_dim, num_heads)
    ones = jnp.ones((1, pos_dim), jnp.float32)
    zeros = jnp.zeros((1, pos_dim), jnp.float32)
    return {
        "w_proj": w_proj, "b_proj": b_proj,
        "g1": ones, "be1": zeros, "w1": w1, "b1": b1,
        "g2": ones, "be2": zeros, "w2": w2, "b2": b2,
        "g3": ones, "be3": zeros, "w3": w3, "b3": b3,
    }


def reference(biases, p):
    def blk(h, g, b, w, bias):
        mu = jnp.mean(h, -1, keepdims=True)
        var = jnp.mean((h - mu) ** 2, -1, keepdims=True)
        hn = (h - mu) * jax.lax.rsqrt(var + _LN_EPS) * g + b
        return jnp.maximum(hn, 0.0) @ w + bias
    h = biases @ p["w_proj"] + p["b_proj"]
    h = blk(h, p["g1"], p["be1"], p["w1"], p["b1"])
    h = blk(h, p["g2"], p["be2"], p["w2"], p["b2"])
    h = blk(h, p["g3"], p["be3"], p["w3"], p["b3"])
    return h


if __name__ == "__main__":
    dim, num_heads = 32, 4          # pos_dim = dim // 4 = 8
    N = 256                         # number of relative-position coordinate pairs

    key = jax.random.PRNGKey(0)
    kb, kp = jax.random.split(key)
    # relative coordinate pairs in [-7, 7], as the module would receive
    biases = jax.random.randint(kb, (N, 2), -7, 8).astype(jnp.float32)
    params = init_params(kp, dim, num_heads)

    out = dynamic_pos_bias(biases, params, num_heads=num_heads)
    out = jax.block_until_ready(out)

    ref = reference(biases, params)
    assert out.shape == (N, num_heads)
    assert jnp.allclose(out, ref, atol=2e-3, rtol=2e-3), "mismatch vs reference"
    print("KERNEL_OK")
</pallas_src>

<mosaic_0001>
module attributes {stable_mosaic.version = 11 : i64} {
  func.func @kernel(%arg0: i32, %arg1: memref<256x2xf32, #tpu.memory_space<vmem>>, %arg2: memref<8x640xf32, #tpu.memory_space<vmem>>, %arg3: memref<256x4xf32, #tpu.memory_space<vmem>>) attributes {dimension_semantics = [#tpu.dimension_semantics<parallel>], iteration_bounds = array<i64: 1>, scalar_prefetch = 0 : i64, scratch_operands = 0 : i64, tpu.core_type = #tpu.core_type<tc>, window_params = [{transform_indices = @transform_0, window_bounds = array<i64: 256, 2>}, {pipeline_mode = #tpu.pipeline_mode<synchronous>, transform_indices = @transform_1, window_bounds = array<i64: 8, 640>}, {transform_indices = @transform_2, window_bounds = array<i64: 256, 4>}]} {
    %c0 = arith.constant 0 : index
    %c0_0 = arith.constant 0 : index
    %0 = vector.load %arg1[%c0, %c0_0] : memref<256x2xf32, #tpu.memory_space<vmem>>, vector<256x2xf32>
    %1 = tpu.transpose %0, [1, 0] : vector<256x2xf32> -> vector<2x256xf32>
    %c0_1 = arith.constant 0 : index
    %c0_2 = arith.constant 0 : index
    %2 = vector.load %arg2[%c0_1, %c0_2] : memref<8x640xf32, #tpu.memory_space<vmem>>, vector<8x1xf32>
    %c0_3 = arith.constant 0 : index
    %c1 = arith.constant 1 : index
    %3 = vector.load %arg2[%c0_3, %c1] : memref<8x640xf32, #tpu.memory_space<vmem>>, vector<8x1xf32>
    %c0_4 = arith.constant 0 : index
    %c128 = arith.constant 128 : index
    %4 = vector.load %arg2[%c0_4, %c128] : memref<8x640xf32, #tpu.memory_space<vmem>>, vector<8x8xf32>
    %c0_5 = arith.constant 0 : index
    %c256 = arith.constant 256 : index
    %5 = vector.load %arg2[%c0_5, %c256] : memref<8x640xf32, #tpu.memory_space<vmem>>, vector<8x8xf32>
    %c0_6 = arith.constant 0 : index
    %c384 = arith.constant 384 : index
    %6 = vector.load %arg2[%c0_6, %c384] : memref<8x640xf32, #tpu.memory_space<vmem>>, vector<8x8xf32>
    %c0_7 = arith.constant 0 : index
    %c512 = arith.constant 512 : index
    %7 = vector.load %arg2[%c0_7, %c512] : memref<8x640xf32, #tpu.memory_space<vmem>>, vector<8x1xf32>
    %c0_8 = arith.constant 0 : index
    %c513 = arith.constant 513 : index
    %8 = vector.load %arg2[%c0_8, %c513] : memref<8x640xf32, #tpu.memory_space<vmem>>, vector<8x1xf32>
    %c0_9 = arith.constant 0 : index
    %c514 = arith.constant 514 : index
    %9 = vector.load %arg2[%c0_9, %c514] : memref<8x640xf32, #tpu.memory_space<vmem>>, vector<8x1xf32>
    %c0_10 = arith.constant 0 : index
    %c515 = arith.constant 515 : index
    %10 = vector.load %arg2[%c0_10, %c515] : memref<8x640xf32, #tpu.memory_space<vmem>>, vector<8x1xf32>
    %c0_11 = arith.constant 0 : index
    %c516 = arith.constant 516 : index
    %11 = vector.load %arg2[%c0_11, %c516] : memref<8x640xf32, #tpu.memory_space<vmem>>, vector<8x1xf32>
    %c0_12 = arith.constant 0 : index
    %c517 = arith.constant 517 : index
    %12 = vector.load %arg2[%c0_12, %c517] : memref<8x640xf32, #tpu.memory_space<vmem>>, vector<8x1xf32>
    %c0_13 = arith.constant 0 : index
    %c518 = arith.constant 518 : index
    %13 = vector.load %arg2[%c0_13, %c518] : memref<8x640xf32, #tpu.memory_space<vmem>>, vector<8x1xf32>
    %c0_14 = arith.constant 0 : index
    %c519 = arith.constant 519 : index
    %14 = vector.load %arg2[%c0_14, %c519] : memref<8x640xf32, #tpu.memory_space<vmem>>, vector<8x1xf32>
    %c0_15 = arith.constant 0 : index
    %c520 = arith.constant 520 : index
    %15 = vector.load %arg2[%c0_15, %c520] : memref<8x640xf32, #tpu.memory_space<vmem>>, vector<8x1xf32>
    %c0_16 = arith.constant 0 : index
    %c521 = arith.constant 521 : index
    %16 = vector.load %arg2[%c0_16, %c521] : memref<8x640xf32, #tpu.memory_space<vmem>>, vector<8x1xf32>
    %17 = vector.extract_strided_slice %1 {offsets = [0, 0], sizes = [1, 256], strides = [1, 1]} : vector<2x256xf32> to vector<1x256xf32>
    %18 = vector.broadcast %2 : vector<8x1xf32> to vector<8x256xf32>
    %19 = vector.broadcast %17 : vector<1x256xf32> to vector<8x256xf32>
    %20 = arith.mulf %18, %19 : vector<8x256xf32>
    %21 = vector.extract_strided_slice %1 {offsets = [1, 0], sizes = [1, 256], strides = [1, 1]} : vector<2x256xf32> to vector<1x256xf32>
    %22 = vector.broadcast %3 : vector<8x1xf32> to vector<8x256xf32>
    %23 = vector.broadcast %21 : vector<1x256xf32> to vector<8x256xf32>
    %24 = arith.mulf %22, %23 : vector<8x256xf32>
    %25 = arith.addf %20, %24 : vector<8x256xf32>
    %26 = vector.broadcast %7 : vector<8x1xf32> to vector<8x256xf32>
    %27 = arith.addf %25, %26 : vector<8x256xf32>
    %cst = arith.constant dense<0.000000e+00> : vector<256xf32>
    %28 = vector.multi_reduction <add>, %27, %cst [0] : vector<8x256xf32> to vector<256xf32>
    %29 = vector.shape_cast %28 : vector<256xf32> to vector<1x256xf32>
    %cst_17 = arith.constant 1.250000e-01 : f32
    %30 = vector.broadcast %cst_17 : f32 to vector<1x256xf32>
    %31 = arith.mulf %29, %30 : vector<1x256xf32>
    %32 = arith.mulf %27, %27 : vector<8x256xf32>
    %cst_18 = arith.constant dense<0.000000e+00> : vector<256xf32>
    %33 = vector.multi_reduction <add>, %32, %cst_18 [0] : vector<8x256xf32> to vector<256xf32>
    %34 = vector.shape_cast %33 : vector<256xf32> to vector<1x256xf32>
    %cst_19 = arith.constant 1.250000e-01 : f32
    %35 = vector.broadcast %cst_19 : f32 to vector<1x256xf32>
    %36 = arith.mulf %34, %35 : vector<1x256xf32>
    %37 = vector.broadcast %31 : vector<1x256xf32> to vector<8x256xf32>
    %38 = arith.subf %27, %37 : vector<8x256xf32>
    %39 = arith.mulf %31, %31 : vector<1x256xf32>
    %40 = arith.subf %36, %39 : vector<1x256xf32>
    %cst_20 = arith.constant 9.99999974E-6 : f32
    %41 = vector.broadcast %cst_20 : f32 to vector<1x256xf32>
    %42 = arith.addf %40, %41 : vector<1x256xf32>
    %43 = math.rsqrt %42 : vector<1x256xf32>
    %44 = vector.broadcast %43 : vector<1x256xf32> to vector<8x256xf32>
    %45 = arith.mulf %38, %44 : vector<8x256xf32>
    %46 = vector.broadcast %8 : vector<8x1xf32> to vector<8x256xf32>
    %47 = arith.mulf %45, %46 : vector<8x256xf32>
    %48 = vector.broadcast %9 : vector<8x1xf32> to vector<8x256xf32>
    %49 = arith.addf %47, %48 : vector<8x256xf32>
    %cst_21 = arith.constant 0.000000e+00 : f32
    %50 = vector.broadcast %cst_21 : f32 to vector<8x256xf32>
    %51 = arith.maximumf %49, %50 : vector<8x256xf32>
    %cst_22 = arith.constant dense<0.000000e+00> : vector<8x256xf32>
    %52 = tpu.matmul %4, %51, %cst_22 {dimension_numbers = #tpu.dot_dimension_numbers<[1], [0], [0], [1], [0, 0, 1, 1], [], []>} : vector<8x8xf32>, vector<8x256xf32>, vector<8x256xf32> -> vector<8x256xf32>
    %53 = vector.broadcast %10 : vector<8x1xf32> to vector<8x256xf32>
    %54 = arith.addf %52, %53 : vector<8x256xf32>
    %cst_23 = arith.constant dense<0.000000e+00> : vector<256xf32>
    %55 = vector.multi_reduction <add>, %54, %cst_23 [0] : vector<8x256xf32> to vector<256xf32>
    %56 = vector.shape_cast %55 : vector<256xf32> to vector<1x256xf32>
    %cst_24 = arith.constant 1.250000e-01 : f32
    %57 = vector.broadcast %cst_24 : f32 to vector<1x256xf32>
    %58 = arith.mulf %56, %57 : vector<1x256xf32>
    %59 = arith.mulf %54, %54 : vector<8x256xf32>
    %cst_25 = arith.constant dense<0.000000e+00> : vector<256xf32>
    %60 = vector.multi_reduction <add>, %59, %cst_25 [0] : vector<8x256xf32> to vector<256xf32>
    %61 = vector.shape_cast %60 : vector<256xf32> to vector<1x256xf32>
    %cst_26 = arith.constant 1.250000e-01 : f32
    %62 = vector.broadcast %cst_26 : f32 to vector<1x256xf32>
    %63 = arith.mulf %61, %62 : vector<1x256xf32>
    %64 = vector.broadcast %58 : vector<1x256xf32> to vector<8x256xf32>
    %65 = arith.subf %54, %64 : vector<8x256xf32>
    %66 = arith.mulf %58, %58 : vector<1x256xf32>
    %67 = arith.subf %63, %66 : vector<1x256xf32>
    %cst_27 = arith.constant 9.99999974E-6 : f32
    %68 = vector.broadcast %cst_27 : f32 to vector<1x256xf32>
    %69 = arith.addf %67, %68 : vector<1x256xf32>
    %70 = math.rsqrt %69 : vector<1x256xf32>
    %71 = vector.broadcast %70 : vector<1x256xf32> to vector<8x256xf32>
    %72 = arith.mulf %65, %71 : vector<8x256xf32>
    %73 = vector.broadcast %11 : vector<8x1xf32> to vector<8x256xf32>
    %74 = arith.mulf %72, %73 : vector<8x256xf32>
    %75 = vector.broadcast %12 : vector<8x1xf32> to vector<8x256xf32>
    %76 = arith.addf %74, %75 : vector<8x256xf32>
    %cst_28 = arith.constant 0.000000e+00 : f32
    %77 = vector.broadcast %cst_28 : f32 to vector<8x256xf32>
    %78 = arith.maximumf %76, %77 : vector<8x256xf32>
    %cst_29 = arith.constant dense<0.000000e+00> : vector<8x256xf32>
    %79 = tpu.matmul %5, %78, %cst_29 {dimension_numbers = #tpu.dot_dimension_numbers<[1], [0], [0], [1], [0, 0, 1, 1], [], []>} : vector<8x8xf32>, vector<8x256xf32>, vector<8x256xf32> -> vector<8x256xf32>
    %80 = vector.broadcast %13 : vector<8x1xf32> to vector<8x256xf32>
    %81 = arith.addf %79, %80 : vector<8x256xf32>
    %cst_30 = arith.constant dense<0.000000e+00> : vector<256xf32>
    %82 = vector.multi_reduction <add>, %81, %cst_30 [0] : vector<8x256xf32> to vector<256xf32>
    %83 = vector.shape_cast %82 : vector<256xf32> to vector<1x256xf32>
    %cst_31 = arith.constant 1.250000e-01 : f32
    %84 = vector.broadcast %cst_31 : f32 to vector<1x256xf32>
    %85 = arith.mulf %83, %84 : vector<1x256xf32>
    %86 = arith.mulf %81, %81 : vector<8x256xf32>
    %cst_32 = arith.constant dense<0.000000e+00> : vector<256xf32>
    %87 = vector.multi_reduction <add>, %86, %cst_32 [0] : vector<8x256xf32> to vector<256xf32>
    %88 = vector.shape_cast %87 : vector<256xf32> to vector<1x256xf32>
    %cst_33 = arith.constant 1.250000e-01 : f32
    %89 = vector.broadcast %cst_33 : f32 to vector<1x256xf32>
    %90 = arith.mulf %88, %89 : vector<1x256xf32>
    %91 = vector.broadcast %85 : vector<1x256xf32> to vector<8x256xf32>
    %92 = arith.subf %81, %91 : vector<8x256xf32>
    %93 = arith.mulf %85, %85 : vector<1x256xf32>
    %94 = arith.subf %90, %93 : vector<1x256xf32>
    %cst_34 = arith.constant 9.99999974E-6 : f32
    %95 = vector.broadcast %cst_34 : f32 to vector<1x256xf32>
    %96 = arith.addf %94, %95 : vector<1x256xf32>
    %97 = math.rsqrt %96 : vector<1x256xf32>
    %98 = vector.broadcast %97 : vector<1x256xf32> to vector<8x256xf32>
    %99 = arith.mulf %92, %98 : vector<8x256xf32>
    %100 = vector.broadcast %14 : vector<8x1xf32> to vector<8x256xf32>
    %101 = arith.mulf %99, %100 : vector<8x256xf32>
    %102 = vector.broadcast %15 : vector<8x1xf32> to vector<8x256xf32>
    %103 = arith.addf %101, %102 : vector<8x256xf32>
    %cst_35 = arith.constant 0.000000e+00 : f32
    %104 = vector.broadcast %cst_35 : f32 to vector<8x256xf32>
    %105 = arith.maximumf %103, %104 : vector<8x256xf32>
    %cst_36 = arith.constant dense<0.000000e+00> : vector<8x256xf32>
    %106 = tpu.matmul %6, %105, %cst_36 {dimension_numbers = #tpu.dot_dimension_numbers<[1], [0], [0], [1], [0, 0, 1, 1], [], []>} : vector<8x8xf32>, vector<8x256xf32>, vector<8x256xf32> -> vector<8x256xf32>
    %107 = vector.broadcast %16 : vector<8x1xf32> to vector<8x256xf32>
    %108 = arith.addf %106, %107 : vector<8x256xf32>
    %109 = tpu.transpose %108, [1, 0] : vector<8x256xf32> -> vector<256x8xf32>
    %110 = vector.extract_strided_slice %109 {offsets = [0, 0], sizes = [256, 4], strides = [1, 1]} : vector<256x8xf32> to vector<256x4xf32>
    %c0_37 = arith.constant 0 : index
    %c0_38 = arith.constant 0 : index
    %111 = vector.load %arg3[%c0_37, %c0_38] : memref<256x4xf32, #tpu.memory_space<vmem>>, vector<256x4xf32>
    tpu.vector_store %arg3[%c0_37, %c0_38], %110 {strides = array<i32>} : memref<256x4xf32, #tpu.memory_space<vmem>>, vector<256x4xf32>,
    return
  }
  func.func @transform_0(%arg0: i32) -> (i32, i32) {
    %c0_i32 = arith.constant 0 : i32
    %c0_i32_0 = arith.constant 0 : i32
    return %arg0, %c0_i32 : i32, i32
  }
  func.func @transform_1(%arg0: i32) -> (i32, i32) {
    %c0_i32 = arith.constant 0 : i32
    %c0_i32_0 = arith.constant 0 : i32
    %c0_i32_1 = arith.constant 0 : i32
    return %c0_i32, %c0_i32_0 : i32, i32
  }
  func.func @transform_2(%arg0: i32) -> (i32, i32) {
    %c0_i32 = arith.constant 0 : i32
    %c0_i32_0 = arith.constant 0 : i32
    return %arg0, %c0_i32 : i32, i32
  }
}

</mosaic_0001>

<bundles_post_ra>
// kernel: tpu_custom_call.1
= control target key start
LH: loop header
LB: loop body
LE: loop exit
PB: predicated region body
PF: predicated region fallthrough
CT: control target
= control target key end

     0   :  { %v692_v0 = vmov 0   ;;  %v693_v3 = vmov 1   ;;  %v694_v36 = vmov 2   ;;  %v695_v37 = vmov 0.0   ;;  %s977_s1 = inlined_call_operand.vmem [shape: f32[8,640], index: 1, kind: input, shape index: {}]   ;;  %s978_s0 = inlined_call_operand.vmem [shape: f32[256,2], index: 0, kind: input, shape index: {}]   ;;  %s979_s2 = inlined_call_operand.vmem [shape: f32[256,4], index: 2, kind: output, shape index: {}]  }
   0x1   :  { %670 = vset.pattern.permute.xlu1 %v692_v0  ;;  %668 = vset.pattern.permute.xlu0 %v692_v0  ;;  %v721_v1 = vld [vmem:[%s977_s1 + $0x20] sm:$0xff]  ;;  %v12_v5 = vld [vmem:[%s978_s0 + $0x8] sm:$0xff]  ;;  %v13_v7 = vld [vmem:[%s978_s0 + $0x10] sm:$0xff]  ;;  %v696_v38 = vmov 3   ;;  %v697_v39 = vmov 5   ;;  %v698_v40 = vmov 4   ;;  %v117_v42 = vlaneseq }
   0x2   :  { %v107_v2 = vld [vmem:[%s977_s1] sm:$0xff]  ;;  %145 = vperm.xlu1 %670, %v721_v1   ;;  %v28_v8 = vld [vmem:[%s978_s0 + $0x88] sm:$0xff]  ;;  %v14_v9 = vld [vmem:[%s978_s0 + $0x18] sm:$0xff]  ;;  %278 = vmatprep.mubr.f32.mxu0 %v695_v37  ;;  %vm210_vm0 = vcmask 64512   ;;  %vm617_vm1 = vcmask 31744  }
   0x3   :  { %114 = vperm.xlu0 %668, %v107_v2   ;;  %v11_v4 = vld [vmem:[%s978_s0] sm:$0xff]  ;;  %v29_v10 = vld [vmem:[%s978_s0 + $0x90] sm:$0xff]  ;;  %v30_v12 = vld [vmem:[%s978_s0 + $0x98] sm:$0xff]  ;;  %412 = vmatprep.mubr.f32.mxu1 %v695_v37  ;;  %v118_v43 = vshrl.u32 %v117_v42, 7 }
   0x4   :  { %v27_v6 = vld [vmem:[%s978_s0 + $0x80] sm:$0xff]  ;;  %v16_v13 = vld [vmem:[%s978_s0 + $0x28] sm:$0xff]  ;;  %v17_v15 = vld [vmem:[%s978_s0 + $0x30] sm:$0xff] }
   0x5   :  { %v15_v11 = vld [vmem:[%s978_s0 + $0x20] sm:$0xff]  ;;  %v32_v16 = vld [vmem:[%s978_s0 + $0xa8] sm:$0xff]  ;;  %v18_v17 = vld [vmem:[%s978_s0 + $0x38] sm:$0xff]  ;;  %v119_v46 = vsub.s32 0, %v118_v43  ;;  %v133_v47 = vsub.s32 1, %v118_v43 }
   0x6   :  { %v31_v14 = vld [vmem:[%s978_s0 + $0xa0] sm:$0xff]  ;;  %v33_v18 = vld [vmem:[%s978_s0 + $0xb0] sm:$0xff]  ;;  %v34_v20 = vld [vmem:[%s978_s0 + $0xb8] sm:$0xff] }
   0x7   :  { %669 = vset.pattern.permute.xlu0 %v693_v3  ;;  %v19_v19 = vld [vmem:[%s978_s0 + $0x40] sm:$0xff]  ;;  %v20_v21 = vld [vmem:[%s978_s0 + $0x48] sm:$0xff]  ;;  %v21_v23 = vld [vmem:[%s978_s0 + $0x50] sm:$0xff] }
   0x8   :  { %128 = vperm.xlu0 %669, %v107_v2   ;;  %v35_v22 = vld [vmem:[%s978_s0 + $0xc0] sm:$0xff]  ;;  %v36_v24 = vld [vmem:[%s978_s0 + $0xc8] sm:$0xff]  ;;  %v22_v25 = vld [vmem:[%s978_s0 + $0x58] sm:$0xff] }
   0x9   :  { %v37_v26 = vld [vmem:[%s978_s0 + $0xd0] sm:$0xff]  ;;  %v23_v27 = vld [vmem:[%s978_s0 + $0x60] sm:$0xff]  ;;  %v38_v28 = vld [vmem:[%s978_s0 + $0xd8] sm:$0xff] }
   0xa   :  { %v24_v29 = vld [vmem:[%s978_s0 + $0x68] sm:$0xff]  ;;  %v39_v30 = vld [vmem:[%s978_s0 + $0xe0] sm:$0xff]  ;;  %v25_v31 = vld [vmem:[%s978_s0 + $0x70] sm:$0xff] }
   0xb   :  { %v40_v32 = vld [vmem:[%s978_s0 + $0xe8] sm:$0xff]  ;;  %v26_v33 = vld [vmem:[%s978_s0 + $0x78] sm:$0xff]  ;;  %v41_v34 = vld [vmem:[%s978_s0 + $0xf0] sm:$0xff] }
   0xc   :  { %v42_v35 = vld [vmem:[%s978_s0 + $0xf8] sm:$0xff] }
  0x26   :  { %43 = vxpose.xlu0.b32.start [1/16] (narrow) %v11_v4, 8 }
  0x2a   :  { %44 = vxpose.xlu0.b32.cont [2/16] (narrow) %v12_v5, 8 }
  0x2b   :  { %75 = vxpose.xlu1.b32.start [1/16] (narrow) %v27_v6, 8 }
  0x2e   :  { %45 = vxpose.xlu0.b32.cont [3/16] (narrow) %v13_v7, 8 }
  0x2f   :  { %76 = vxpose.xlu1.b32.cont [2/16] (narrow) %v28_v8, 8 }
  0x32   :  { %46 = vxpose.xlu0.b32.cont [4/16] (narrow) %v14_v9, 8 }
  0x33   :  { %77 = vxpose.xlu1.b32.cont [3/16] (narrow) %v29_v10, 8 }
  0x36   :  { %47 = vxpose.xlu0.b32.cont [5/16] (narrow) %v15_v11, 8 }
  0x37   :  { %78 = vxpose.xlu1.b32.cont [4/16] (narrow) %v30_v12, 8 }
  0x3a   :  { %48 = vxpose.xlu0.b32.cont [6/16] (narrow) %v16_v13, 8 }
  0x3b   :  { %79 = vxpose.xlu1.b32.cont [5/16] (narrow) %v31_v14, 8 }
  0x3e   :  { %49 = vxpose.xlu0.b32.cont [7/16] (narrow) %v17_v15, 8 }
  0x3f   :  { %80 = vxpose.xlu1.b32.cont [6/16] (narrow) %v32_v16, 8 }
  0x42   :  { %50 = vxpose.xlu0.b32.cont [8/16] (narrow) %v18_v17, 8 }
  0x43   :  { %81 = vxpose.xlu1.b32.cont [7/16] (narrow) %v33_v18, 8 }
  0x46   :  { %51 = vxpose.xlu0.b32.cont [9/16] (narrow) %v19_v19, 8 }
  0x47   :  { %82 = vxpose.xlu1.b32.cont [8/16] (narrow) %v34_v20, 8 }
  0x4a   :  { %52 = vxpose.xlu0.b32.cont [10/16] (narrow) %v20_v21, 8 }
  0x4b   :  { %83 = vxpose.xlu1.b32.cont [9/16] (narrow) %v35_v22, 8 }
  0x4e   :  { %53 = vxpose.xlu0.b32.cont [11/16] (narrow) %v21_v23, 8 }
  0x4f   :  { %84 = vxpose.xlu1.b32.cont [10/16] (narrow) %v36_v24, 8 }
  0x52   :  { %54 = vxpose.xlu0.b32.cont [12/16] (narrow) %v22_v25, 8 }
  0x53   :  { %85 = vxpose.xlu1.b32.cont [11/16] (narrow) %v37_v26, 8 }
  0x56   :  { %55 = vxpose.xlu0.b32.cont [13/16] (narrow) %v23_v27, 8 }
  0x57   :  { %86 = vxpose.xlu1.b32.cont [12/16] (narrow) %v38_v28, 8 }
  0x5a   :  { %56 = vxpose.xlu0.b32.cont [14/16] (narrow) %v24_v29, 8 }
  0x5b   :  { %87 = vxpose.xlu1.b32.cont [13/16] (narrow) %v39_v30, 8 }
  0x5e   :  { %57 = vxpose.xlu0.b32.cont [15/16] (narrow) %v25_v31, 8 }
  0x5f   :  { %88 = vxpose.xlu1.b32.cont [14/16] (narrow) %v40_v32, 8 }
  0x62   :  { %58 = vxpose.xlu0.b32.end [16/16] (narrow) %v26_v33, 8 }
  0x63   :  { %89 = vxpose.xlu1.b32.cont [15/16] (narrow) %v41_v34, 8 }
  0x67   :  { %90 = vxpose.xlu1.b32.end [16/16] (narrow) %v42_v35, 8 }
  0x81   :  { %v146_v45 = vpop.permute.xlu1 %145 }
  0x82   :  { %v115_v41 = vpop.permute.xlu0 %114 }
  0x85   :  { %671 = vset.pattern.permute.xlu1 %v694_v36 }
  0x86   :  { %199 = vperm.xlu1 %671, %v721_v1  }
  0x87   :  { %v129_v44 = vpop.permute.xlu0 %128 }
  0x8a   :  { %672 = vset.pattern.permute.xlu1 %v696_v38 }
  0x8b   :  { %193 = vperm.xlu0 %669, %v721_v1   ;;  %207 = vperm.xlu1 %672, %v721_v1  }
  0x8f   :  { %674 = vset.pattern.permute.xlu0 %v697_v39  ;;  %673 = vset.pattern.permute.xlu1 %v698_v40 }
  0x90   :  { %334 = vperm.xlu0 %674, %v721_v1   ;;  %328 = vperm.xlu1 %673, %v721_v1  }
  0xa6   :  { %v59_v48 = vpop.trf.xlu0 }
  0xa7   :  { %v120_v50 = vrot.slane %v59_v48, %v119_v46  ;;  %v134_v51 = vrot.slane %v59_v48, %v133_v47 }
  0xa9   :  { %v125_v54 = vmul.f32 %v120_v50, %v115_v41  ;;  %v139_v55 = vmul.f32 %v134_v51, %v129_v44  ;;  %v108_v50 = vld [vmem:[%s977_s1 + $0x8] sm:$0xff]  ;;  %v699_v51 = vmov 6  }
  0xaa   :  { %675 = vset.pattern.permute.xlu1 %v699_v51 }
  0xab   :  { %v91_v49 = vpop.trf.xlu1  ;;  %v141_v58 = vadd.f32 %v139_v55, %v125_v54  ;;  %342 = vperm.xlu1 %675, %v721_v1  }
  0xac   :  { %v124_v52 = vrot.slane %v91_v49, %v119_v46  ;;  %v138_v53 = vrot.slane %v91_v49, %v133_v47 }
  0xad   :  { %v148_v60 = vadd.f32 %v146_v45, %v141_v58 }
  0xae   :  { %v126_v56 = vmul.f32 %v124_v52, %v115_v41  ;;  %v140_v57 = vmul.f32 %v138_v53, %v129_v44  ;;  %v700_v52 = vmov 8   ;;  %v701_v53 = vmov 7  }
  0xaf   :  { %v164_v62 = vmul.f32 %v148_v60, %v148_v60  ;;  %v150_v63 = vrot.slane %v148_v60, 4  ;;  %677 = vset.pattern.permute.xlu0 %v700_v52  ;;  %676 = vset.pattern.permute.xlu1 %v701_v53 }
  0xb0   :  { %v142_v59 = vadd.f32 %v140_v57, %v126_v56  ;;  %468 = vperm.xlu0 %677, %v721_v1   ;;  %462 = vperm.xlu1 %676, %v721_v1  }
  0xb1   :  { %v166_v3 = vrot.slane %v164_v62, 4  ;;  %v151_v4 = vadd.f32 %v150_v63, %v148_v60 }
  0xb2   :  { %v149_v61 = vadd.f32 %v146_v45, %v142_v59 }
  0xb3   :  { %v167_v7 = vadd.f32 %v166_v3, %v164_v62  ;;  %v152_v8 = vrot.slane %v151_v4, 2 }
  0xb4   :  { %v165_v0 = vmul.f32 %v149_v61, %v149_v61  ;;  %v156_v2 = vrot.slane %v149_v61, 4 }
  0xb5   :  { %v153_v11 = vadd.f32 %v152_v8, %v151_v4  ;;  %v168_v12 = vrot.slane %v167_v7, 2 }
  0xb6   :  { %v172_v5 = vrot.slane %v165_v0, 4  ;;  %v157_v6 = vadd.f32 %v156_v2, %v149_v61 }
  0xb7   :  { %v154_v15 = vrot.slane %v153_v11, 1  ;;  %v169_v16 = vadd.f32 %v168_v12, %v167_v7 }
  0xb8   :  { %v173_v9 = vadd.f32 %v172_v5, %v165_v0  ;;  %v158_v10 = vrot.slane %v157_v6, 2 }
  0xb9   :  { %v155_v19 = vadd.f32 %v154_v15, %v153_v11  ;;  %v170_v20 = vrot.slane %v169_v16, 1 }
  0xba   :  { %v159_v13 = vadd.f32 %v158_v10, %v157_v6  ;;  %v174_v14 = vrot.slane %v173_v9, 2 }
  0xbb   :  { %v162_v23 = vmul.f32 0.125, %v155_v19  ;;  %v171_v24 = vadd.f32 %v170_v20, %v169_v16 }
  0xbc   :  { %v160_v17 = vrot.slane %v159_v13, 1  ;;  %v175_v18 = vadd.f32 %v174_v14, %v173_v9 }
  0xbd   :  { %v178_v27 = vmul.f32 0.125, %v171_v24  ;;  %v182_v28 = vmul.f32 %v162_v23, %v162_v23  ;;  %v180_v38 = vsub.f32 %v148_v60, %v162_v23 }
  0xbe   :  { %v161_v21 = vadd.f32 %v160_v17, %v159_v13  ;;  %v176_v22 = vrot.slane %v175_v18, 1 }
  0xbf   :  { %v184_v31 = vsub.f32 %v178_v27, %v182_v28 }
  0xc0   :  { %v163_v25 = vmul.f32 0.125, %v161_v21  ;;  %v177_v26 = vadd.f32 %v176_v22, %v175_v18 }
  0xc1   :  { %v186_v33 = vadd.f32 1e-05, %v184_v31 }
  0xc2   :  { %v179_v29 = vmul.f32 0.125, %v177_v26  ;;  %v183_v30 = vmul.f32 %v163_v25, %v163_v25  ;;  %v181_v39 = vsub.f32 %v149_v61, %v163_v25 }
  0xc3   :  { %680 = vrsqrt.f32 %v186_v33 }
  0xc4   :  { %v185_v32 = vsub.f32 %v179_v29, %v183_v30 }
  0xc6   :  { %v187_v34 = vadd.f32 1e-05, %v185_v32 }
  0xc8   :  { %682 = vrsqrt.f32 %v187_v34 }
  0xcd   :  { %v681_v35 = vpop.eup %680 }
  0xce   :  { %v190_v40 = vmul.f32 %v681_v35, %v180_v38 }
  0xd2   :  { %v683_v36 = vpop.eup %682 }
  0xd3   :  { %v191_v41 = vmul.f32 %v683_v36, %v181_v39 }
 0x105   :  { %v200_v43 = vpop.permute.xlu1 %199 }
 0x10a   :  { %v194_v42 = vpop.permute.xlu0 %193  ;;  %v208_v54 = vpop.permute.xlu1 %207 }
 0x10b   :  { %v196_v44 = vmul.f32 %v194_v42, %v190_v40  ;;  %v197_v45 = vmul.f32 %v194_v42, %v191_v41 }
 0x10d   :  { %v202_v46 = vadd.f32 %v200_v43, %v196_v44  ;;  %v203_v47 = vadd.f32 %v200_v43, %v197_v45 }
 0x10f   :  { %v205_v48 = vmax.f32 %v203_v47, 0.0  ;;  %v204_v49 = vmax.f32 %v202_v46, 0.0  ;;  %v329_v33 = vpop.permute.xlu1 %328  ;;  %v335_v39 = vpop.permute.xlu0 %334  ;;  %v109_v46 = vld [vmem:[%s977_s1 + $0x10] sm:$0xff]  ;;  %v702_v47 = vmov 9  }
 0x110   :  { %678 = vset.pattern.permute.xlu1 %v702_v47 }
 0x111   :  { %214 = vmatprep.subr.mxu0 %v205_v48  ;;  %476 = vperm.xlu1 %678, %v721_v1  }
 0x112   :  { %215 = vmatpush1.msra.mxu0 %v204_v49 }
 0x113   :  { %654 = vmatmul.mubr.msk.f32.vlgmr.msra.gmra.mrb[0].mxu0 %vm210_vm0, %v108_v50 }
 0x114   :  { %546 = vmatprep.mubr.f32.mxu0 %v695_v37 }
 0x12a   :  { %v343_v48 = vpop.permute.xlu1 %342 }
 0x1e6   :  { %v280_v55 = vpop.f32.mrb[0].mxu0 }
 0x1e7   :  { %v281_v56 = vadd.f32 %v280_v55, %v208_v54  ;;  %v282_v57 = vpop.f32.mrb[1].mxu0 }
 0x1e8   :  { %v283_v58 = vadd.f32 %v282_v57, %v208_v54 }
 0x1e9   :  { %v285_v59 = vrot.slane %v281_v56, 4  ;;  %v299_v60 = vmul.f32 %v281_v56, %v281_v56 }
 0x1ea   :  { %v291_v37 = vrot.slane %v283_v58, 4  ;;  %v300_v61 = vmul.f32 %v283_v58, %v283_v58 }
 0x1eb   :  { %v286_v62 = vadd.f32 %v285_v59, %v281_v56  ;;  %v301_v63 = vrot.slane %v299_v60, 4 }
 0x1ec   :  { %v292_v0 = vadd.f32 %v291_v37, %v283_v58  ;;  %v307_v2 = vrot.slane %v300_v61, 4 }
 0x1ed   :  { %v287_v3 = vrot.slane %v286_v62, 2  ;;  %v302_v4 = vadd.f32 %v301_v63, %v299_v60 }
 0x1ee   :  { %v293_v5 = vrot.slane %v292_v0, 2  ;;  %v308_v6 = vadd.f32 %v307_v2, %v300_v61 }
 0x1ef   :  { %v303_v7 = vrot.slane %v302_v4, 2  ;;  %v288_v8 = vadd.f32 %v287_v3, %v286_v62 }
 0x1f0   :  { %v309_v9 = vrot.slane %v308_v6, 2  ;;  %v294_v10 = vadd.f32 %v293_v5, %v292_v0 }
 0x1f1   :  { %v304_v11 = vadd.f32 %v303_v7, %v302_v4  ;;  %v289_v12 = vrot.slane %v288_v8, 1 }
 0x1f2   :  { %v310_v13 = vadd.f32 %v309_v9, %v308_v6  ;;  %v295_v14 = vrot.slane %v294_v10, 1 }
 0x1f3   :  { %v305_v15 = vrot.slane %v304_v11, 1  ;;  %v290_v16 = vadd.f32 %v289_v12, %v288_v8 }
 0x1f4   :  { %v311_v17 = vrot.slane %v310_v13, 1  ;;  %v296_v18 = vadd.f32 %v295_v14, %v294_v10 }
 0x1f5   :  { %v297_v19 = vmul.f32 0.125, %v290_v16  ;;  %v306_v20 = vadd.f32 %v305_v15, %v304_v11 }
 0x1f6   :  { %v298_v21 = vmul.f32 0.125, %v296_v18  ;;  %v312_v22 = vadd.f32 %v311_v17, %v310_v13 }
 0x1f7   :  { %v313_v23 = vmul.f32 0.125, %v306_v20  ;;  %v317_v24 = vmul.f32 %v297_v19, %v297_v19  ;;  %v315_v31 = vsub.f32 %v281_v56, %v297_v19 }
 0x1f8   :  { %v314_v25 = vmul.f32 0.125, %v312_v22  ;;  %v318_v26 = vmul.f32 %v298_v21, %v298_v21  ;;  %v316_v34 = vsub.f32 %v283_v58, %v298_v21 }
 0x1f9   :  { %v319_v27 = vsub.f32 %v313_v23, %v317_v24 }
 0x1fa   :  { %v320_v28 = vsub.f32 %v314_v25, %v318_v26  ;;  %v463_v26 = vpop.permute.xlu1 %462 }
 0x1fb   :  { %v321_v29 = vadd.f32 1e-05, %v319_v27 }
 0x1fc   :  { %v322_v30 = vadd.f32 1e-05, %v320_v28 }
 0x1fd   :  { %684 = vrsqrt.f32 %v321_v29 }
 0x1fe   :  { %686 = vrsqrt.f32 %v322_v30 }
 0x207   :  { %v685_v32 = vpop.eup %684 }
 0x208   :  { %v687_v35 = vpop.eup %686  ;;  %v325_v36 = vmul.f32 %v685_v32, %v315_v31  ;;  %v469_v31 = vpop.permute.xlu0 %468 }
 0x209   :  { %v326_v38 = vmul.f32 %v687_v35, %v316_v34 }
 0x20a   :  { %v331_v40 = vmul.f32 %v329_v33, %v325_v36 }
 0x20b   :  { %v332_v41 = vmul.f32 %v329_v33, %v326_v38 }
 0x20c   :  { %v337_v42 = vadd.f32 %v335_v39, %v331_v40  ;;  %v477_v40 = vpop.permute.xlu1 %476 }
 0x20d   :  { %v338_v43 = vadd.f32 %v335_v39, %v332_v41  ;;  %v110_v39 = vld [vmem:[%s977_s1 + $0x18] sm:$0xff] }
 0x20e   :  { %v339_v45 = vmax.f32 %v337_v42, 0.0 }
 0x20f   :  { %v340_v44 = vmax.f32 %v338_v43, 0.0 }
 0x211   :  { %348 = vmatprep.subr.mxu1 %v340_v44 }
 0x212   :  { %349 = vmatpush1.msra.mxu1 %v339_v45 }
 0x213   :  { %655 = vmatmul.mubr.msk.f32.vlgmr.msra.gmra.mrb[0].mxu1 %vm210_vm0, %v109_v46 }
 0x2e6   :  { %v414_v49 = vpop.f32.mrb[0].mxu1 }
 0x2e7   :  { %v415_v50 = vadd.f32 %v414_v49, %v343_v48  ;;  %v416_v51 = vpop.f32.mrb[1].mxu1 }
 0x2e8   :  { %v417_v52 = vadd.f32 %v416_v51, %v343_v48 }
 0x2e9   :  { %v419_v53 = vrot.slane %v415_v50, 4  ;;  %v433_v54 = vmul.f32 %v415_v50, %v415_v50 }
 0x2ea   :  { %v425_v55 = vrot.slane %v417_v52, 4  ;;  %v434_v56 = vmul.f32 %v417_v52, %v417_v52 }
 0x2eb   :  { %v420_v57 = vadd.f32 %v419_v53, %v415_v50  ;;  %v435_v58 = vrot.slane %v433_v54, 4 }
 0x2ec   :  { %v426_v59 = vadd.f32 %v425_v55, %v417_v52  ;;  %v441_v60 = vrot.slane %v434_v56, 4 }
 0x2ed   :  { %v421_v37 = vrot.slane %v420_v57, 2  ;;  %v436_v61 = vadd.f32 %v435_v58, %v433_v54 }
 0x2ee   :  { %v427_v62 = vrot.slane %v426_v59, 2  ;;  %v442_v63 = vadd.f32 %v441_v60, %v434_v56 }
 0x2ef   :  { %v437_v0 = vrot.slane %v436_v61, 2  ;;  %v422_v2 = vadd.f32 %v421_v37, %v420_v57 }
 0x2f0   :  { %v443_v1 = vrot.slane %v442_v63, 2  ;;  %v428_v3 = vadd.f32 %v427_v62, %v426_v59 }
 0x2f1   :  { %v438_v4 = vadd.f32 %v437_v0, %v436_v61  ;;  %v423_v5 = vrot.slane %v422_v2, 1 }
 0x2f2   :  { %v444_v6 = vadd.f32 %v443_v1, %v442_v63  ;;  %v429_v7 = vrot.slane %v428_v3, 1 }
 0x2f3   :  { %v439_v8 = vrot.slane %v438_v4, 1  ;;  %v424_v9 = vadd.f32 %v423_v5, %v422_v2 }
 0x2f4   :  { %v445_v10 = vrot.slane %v444_v6, 1  ;;  %v430_v11 = vadd.f32 %v429_v7, %v428_v3 }
 0x2f5   :  { %v431_v12 = vmul.f32 0.125, %v424_v9  ;;  %v440_v13 = vadd.f32 %v439_v8, %v438_v4 }
 0x2f6   :  { %v432_v14 = vmul.f32 0.125, %v430_v11  ;;  %v446_v15 = vadd.f32 %v445_v10, %v444_v6 }
 0x2f7   :  { %v447_v16 = vmul.f32 0.125, %v440_v13  ;;  %v451_v17 = vmul.f32 %v431_v12, %v431_v12  ;;  %v449_v24 = vsub.f32 %v415_v50, %v431_v12 }
 0x2f8   :  { %v448_v18 = vmul.f32 0.125, %v446_v15  ;;  %v452_v19 = vmul.f32 %v432_v14, %v432_v14  ;;  %v450_v27 = vsub.f32 %v417_v52, %v432_v14 }
 0x2f9   :  { %v453_v20 = vsub.f32 %v447_v16, %v451_v17 }
 0x2fa   :  { %v454_v21 = vsub.f32 %v448_v18, %v452_v19 }
 0x2fb   :  { %v455_v22 = vadd.f32 1e-05, %v453_v20 }
 0x2fc   :  { %v456_v23 = vadd.f32 1e-05, %v454_v21 }
 0x2fd   :  { %688 = vrsqrt.f32 %v455_v22 }
 0x2fe   :  { %690 = vrsqrt.f32 %v456_v23 }
 0x307   :  { %v689_v25 = vpop.eup %688 }
 0x308   :  { %v691_v28 = vpop.eup %690  ;;  %v459_v29 = vmul.f32 %v689_v25, %v449_v24 }
 0x309   :  { %v460_v30 = vmul.f32 %v691_v28, %v450_v27 }
 0x30a   :  { %v465_v32 = vmul.f32 %v463_v26, %v459_v29 }
 0x30b   :  { %v466_v33 = vmul.f32 %v463_v26, %v460_v30 }
 0x30c   :  { %v471_v34 = vadd.f32 %v469_v31, %v465_v32 }
 0x30d   :  { %v472_v35 = vadd.f32 %v469_v31, %v466_v33 }
 0x30e   :  { %v473_v38 = vmax.f32 %v471_v34, 0.0 }
 0x30f   :  { %v474_v36 = vmax.f32 %v472_v35, 0.0 }
 0x311   :  { %482 = vmatprep.subr.mxu0 %v474_v36 }
 0x312   :  { %483 = vmatpush1.msra.mxu0 %v473_v38 }
 0x313   :  { %656 = vmatmul.mubr.msk.f32.vlgmr.msra.gmra.mrb[2].mxu0 %vm210_vm0, %v110_v39 }
 0x3e6   :  { %v548_v41 = vpop.f32.mrb[2].mxu0 }
 0x3e7   :  { %v549_v42 = vadd.f32 %v548_v41, %v477_v40  ;;  %v550_v43 = vpop.f32.mrb[3].mxu0 }
 0x3e8   :  { %v551_v44 = vadd.f32 %v550_v43, %v477_v40 }
 0x3e9   :  { %553 = vxpose.xlu1.b32.start.end [1/1] (short) %v549_v42, 128 }
 0x3ea   :  { %585 = vxpose.xlu0.b32.start.end [1/1] (short) %v551_v44, 128 }
 0x413   :  { %679 = vset.pattern.permute.xlu0 %v702_v47 }
 0x469   :  { %v569_v45 = vpop.trf.xlu1 }
 0x46a   :  { %v601_v46 = vpop.trf.xlu0  ;;  %618 = vst.msk [vmem:[%s979_s2] sm:$0xff] %vm617_vm1, %v569_v45 }
 0x46b   :  { %634 = vst.msk [vmem:[%s979_s2 + $0x80] sm:$0xff] %vm617_vm1, %v601_v46 }
 0x46d   :  { %v570_v48 = vpop.trf.xlu1 }
 0x46e   :  { %v602_v49 = vpop.trf.xlu0  ;;  %619 = vst.msk [vmem:[%s979_s2 + $0x8] sm:$0xff] %vm617_vm1, %v570_v48 }
 0x46f   :  { %635 = vst.msk [vmem:[%s979_s2 + $0x88] sm:$0xff] %vm617_vm1, %v602_v49 }
 0x471   :  { %v571_v47 = vpop.trf.xlu1 }
 0x472   :  { %v603_v50 = vpop.trf.xlu0  ;;  %620 = vst.msk [vmem:[%s979_s2 + $0x10] sm:$0xff] %vm617_vm1, %v571_v47 }
 0x473   :  { %636 = vst.msk [vmem:[%s979_s2 + $0x90] sm:$0xff] %vm617_vm1, %v603_v50 }
 0x475   :  { %v572_v51 = vpop.trf.xlu1 }
 0x476   :  { %v604_v52 = vpop.trf.xlu0  ;;  %621 = vst.msk [vmem:[%s979_s2 + $0x18] sm:$0xff] %vm617_vm1, %v572_v51 }
 0x477   :  { %637 = vst.msk [vmem:[%s979_s2 + $0x98] sm:$0xff] %vm617_vm1, %v604_v52 }
 0x479   :  { %v573_v53 = vpop.trf.xlu1 }
 0x47a   :  { %v605_v54 = vpop.trf.xlu0  ;;  %622 = vst.msk [vmem:[%s979_s2 + $0x20] sm:$0xff] %vm617_vm1, %v573_v53 }
 0x47b   :  { %638 = vst.msk [vmem:[%s979_s2 + $0xa0] sm:$0xff] %vm617_vm1, %v605_v54 }
 0x47d   :  { %v574_v55 = vpop.trf.xlu1 }
 0x47e   :  { %v606_v56 = vpop.trf.xlu0  ;;  %623 = vst.msk [vmem:[%s979_s2 + $0x28] sm:$0xff] %vm617_vm1, %v574_v55 }
 0x47f   :  { %639 = vst.msk [vmem:[%s979_s2 + $0xa8] sm:$0xff] %vm617_vm1, %v606_v56 }
 0x481   :  { %v575_v57 = vpop.trf.xlu1 }
 0x482   :  { %v607_v58 = vpop.trf.xlu0  ;;  %624 = vst.msk [vmem:[%s979_s2 + $0x30] sm:$0xff] %vm617_vm1, %v575_v57 }
 0x483   :  { %640 = vst.msk [vmem:[%s979_s2 + $0xb0] sm:$0xff] %vm617_vm1, %v607_v58 }
 0x485   :  { %v576_v59 = vpop.trf.xlu1 }
 0x486   :  { %v608_v60 = vpop.trf.xlu0  ;;  %625 = vst.msk [vmem:[%s979_s2 + $0x38] sm:$0xff] %vm617_vm1, %v576_v59 }
 0x487   :  { %641 = vst.msk [vmem:[%s979_s2 + $0xb8] sm:$0xff] %vm617_vm1, %v608_v60 }
 0x489   :  { %v577_v37 = vpop.trf.xlu1 }
 0x48a   :  { %v609_v61 = vpop.trf.xlu0  ;;  %626 = vst.msk [vmem:[%s979_s2 + $0x40] sm:$0xff] %vm617_vm1, %v577_v37 }
 0x48b   :  { %642 = vst.msk [vmem:[%s979_s2 + $0xc0] sm:$0xff] %vm617_vm1, %v609_v61 }
 0x48d   :  { %v578_v62 = vpop.trf.xlu1 }
 0x48e   :  { %v610_v63 = vpop.trf.xlu0  ;;  %627 = vst.msk [vmem:[%s979_s2 + $0x48] sm:$0xff] %vm617_vm1, %v578_v62 }
 0x48f   :  { %643 = vst.msk [vmem:[%s979_s2 + $0xc8] sm:$0xff] %vm617_vm1, %v610_v63 }
 0x491   :  { %v579_v0 = vpop.trf.xlu1 }
 0x492   :  { %v611_v2 = vpop.trf.xlu0  ;;  %628 = vst.msk [vmem:[%s979_s2 + $0x50] sm:$0xff] %vm617_vm1, %v579_v0 }
 0x493   :  { %644 = vst.msk [vmem:[%s979_s2 + $0xd0] sm:$0xff] %vm617_vm1, %v611_v2 }
 0x495   :  { %v580_v1 = vpop.trf.xlu1 }
 0x496   :  { %v612_v3 = vpop.trf.xlu0  ;;  %629 = vst.msk [vmem:[%s979_s2 + $0x58] sm:$0xff] %vm617_vm1, %v580_v1 }
 0x497   :  { %645 = vst.msk [vmem:[%s979_s2 + $0xd8] sm:$0xff] %vm617_vm1, %v612_v3 }
 0x499   :  { %v581_v4 = vpop.trf.xlu1 }
 0x49a   :  { %v613_v5 = vpop.trf.xlu0  ;;  %630 = vst.msk [vmem:[%s979_s2 + $0x60] sm:$0xff] %vm617_vm1, %v581_v4 }
 0x49b   :  { %646 = vst.msk [vmem:[%s979_s2 + $0xe0] sm:$0xff] %vm617_vm1, %v613_v5 }
 0x49d   :  { %v582_v6 = vpop.trf.xlu1 }
 0x49e   :  { %v614_v7 = vpop.trf.xlu0  ;;  %631 = vst.msk [vmem:[%s979_s2 + $0x68] sm:$0xff] %vm617_vm1, %v582_v6 }
 0x49f   :  { %647 = vst.msk [vmem:[%s979_s2 + $0xe8] sm:$0xff] %vm617_vm1, %v614_v7 }
 0x4a1   :  { %v583_v8 = vpop.trf.xlu1 }
 0x4a2   :  { %v615_v9 = vpop.trf.xlu0  ;;  %632 = vst.msk [vmem:[%s979_s2 + $0x70] sm:$0xff] %vm617_vm1, %v583_v8 }
 0x4a3   :  { %648 = vst.msk [vmem:[%s979_s2 + $0xf0] sm:$0xff] %vm617_vm1, %v615_v9 }
 0x4a5   :  { %v584_v10 = vpop.trf.xlu1 }
 0x4a6   :  { %v616_v11 = vpop.trf.xlu0  ;;  %633 = vst.msk [vmem:[%s979_s2 + $0x78] sm:$0xff] %vm617_vm1, %v584_v10 }
 0x4a7   :  { %649 = vst.msk [vmem:[%s979_s2 + $0xf8] sm:$0xff] %vm617_vm1, %v616_v11 }

</bundles_post_ra>
